<compile_context>
chip_gen: v5e
topology: v5e:2x2
jax: 0.10.0
libtpu: 0.0.40
codegen_flags: <defaults>
</compile_context>

<pallas_src>
import jax
import jax.numpy as jnp
import numpy as np
from jax import lax
from jax.experimental import pallas as pl
from jax.experimental.pallas import tpu as pltpu


# ----------------------------- Pallas kernel ------------------------------ #
def lstm_head_kernel(x_ref, wih_t_ref, whh_t_ref, b_ref,
                     w1_t_ref, b1_ref, w2_ref, b2_ref, out_ref):
    # x_ref: (1, T*Bt, I) time-major rows for this batch tile (row = t*Bt + b).
    Bt = out_ref.shape[0]
    TB = x_ref.shape[1]
    T = TB // Bt
    H = whh_t_ref.shape[0]

    # Hoisted input projection for ALL timesteps in one MXU dot + fused
    # (pre-scaled) biases.  Off the serial critical path.
    gx = jnp.dot(x_ref[0], wih_t_ref[...],
                 preferred_element_type=jnp.float32) + b_ref[...]   # (T*Bt, 4H)

    # Loop-invariant operands, loaded/built once (hoisted out of the loop).
    whh_t = whh_t_ref[...]                                           # (H, 4H)
    lane = lax.broadcasted_iota(jnp.int32, (Bt, 4 * H), 1)
    g_lanes = (lane >= 2 * H) & (lane < 3 * H)                       # tanh (g) cols

    h = jnp.zeros((Bt, H), jnp.float32)
    c = jnp.zeros((Bt, H), jnp.float32)

    # Fully unrolled recurrence (T small & static); only h @ Whh^T is serial.
    # PyTorch gate order: [i, f, g, o].  The i/f/o columns were pre-scaled by
    # 0.5 in the wrapper, so a SINGLE full-width tanh gives all activations:
    #   sigmoid(x) = 0.5 * tanh(x/2) + 0.5   (i, f, o lanes)
    #   tanh(x)                              (g lanes)
    # TODO(synk): A/B holding Whh^T resident via pltpu.matmul_push_rhs /
    #   matmul_acc_lhs / matmul_pop (or a VPU broadcast-multiply-add matvec)
    #   against this jnp.dot; needs a bundle dump per chip generation.
    # TODO(synk): reorder gate columns in the wrapper / use pltpu.roll to trim
    #   the residual 32-lane rotates in the c/h update (bundle-dump verify).
    # TODO(synk): if T grows beyond ~16, switch to lax.fori_loop(unroll=small)
    #   with gx staged in a VMEM scratch to keep vreg pressure flat.
    for t in range(T):
        gates = gx[t * Bt:(t + 1) * Bt, :] + jnp.dot(
            h, whh_t, preferred_element_type=jnp.float32)            # (Bt, 4H)
        y = jnp.tanh(gates)                                          # 1 EUP pass
        act = jnp.where(g_lanes, y, 0.5 * y + 0.5)
        i_g = act[:, 0 * H:1 * H]
        f_g = act[:, 1 * H:2 * H]
        g_g = act[:, 2 * H:3 * H]
        o_g = act[:, 3 * H:4 * H]
        c = f_g * c + i_g * g_g
        h = o_g * jnp.tanh(c)

    # FC head on the last hidden state.
    z1 = jnp.maximum(
        jnp.dot(h, w1_t_ref[...], preferred_element_type=jnp.float32)
        + b1_ref[...], 0.0)                                          # (Bt, 32)
    # fc2 has a single output feature -> VPU mul + lane reduction (no N=1 MXU).
    z2 = jnp.sum(z1 * w2_ref[...], axis=-1, keepdims=True) + b2_ref[...]
    out_ref[...] = jax.nn.sigmoid(z2)                                # (Bt, 1)


# ------------------------------- Wrapper ----------------------------------- #
def risk_assessment_forward(x_btI, params, *, batch_tile=128):
    """x_btI: (B, T, I) float32, PyTorch batch_first layout."""
    B, T, I = x_btI.shape
    H = params["whh"].shape[-1]

    # Batch tile: multiple of 8 (sublane), capped at `batch_tile`; pad batch.
    bt = min(int(batch_tile), max(8, 8 * (-(-B // 8))))
    bt = max(8, (bt // 8) * 8)
    n_tiles = -(-B // bt)
    Bpad = n_tiles * bt

    # Zero-pad batch, then rearrange wrapper-side (layout plumbing is free in
    # XLA) so each grid step sees a contiguous (T*bt, I) time-major slab:
    # row index inside a tile = t*bt + b.
    x_p = jnp.zeros((Bpad, T, I), jnp.float32).at[:B].set(
        x_btI.astype(jnp.float32))
    x_g = (jnp.transpose(x_p, (1, 0, 2))          # (T, Bpad, I)
           .reshape(T, n_tiles, bt, I)
           .transpose(1, 0, 2, 3)                 # (G, T, bt, I)
           .reshape(n_tiles, T * bt, I))          # (G, T*bt, I)

    # One-time weight transposes + bias fusion, plus the 0.5 pre-scale on the
    # sigmoid (i, f, o) gate columns so the kernel needs one tanh per step.
    scale = jnp.concatenate([
        jnp.full((2 * H,), 0.5, jnp.float32),     # i, f
        jnp.ones((H,), jnp.float32),              # g (true tanh gate)
        jnp.full((H,), 0.5, jnp.float32),         # o
    ])
    wih_t = params["wih"].T * scale                               # (I, 4H)
    whh_t = params["whh"].T * scale                               # (H, 4H)
    b = ((params["bih"] + params["bhh"]) * scale).reshape(1, 4 * H)
    w1_t = params["w1"].T                                         # (H, 32)
    b1 = params["b1"].reshape(1, 32)
    w2 = params["w2"].reshape(1, 32)
    b2 = params["b2"].reshape(1, 1)

    def _full_spec(a):
        return pl.BlockSpec(a.shape, lambda g: (0,) * a.ndim)

    out = pl.pallas_call(
        lstm_head_kernel,
        out_shape=jax.ShapeDtypeStruct((Bpad, 1), jnp.float32),
        grid=(n_tiles,),
        in_specs=[
            pl.BlockSpec((1, T * bt, I), lambda g: (g, 0, 0)),    # x tile
            _full_spec(wih_t), _full_spec(whh_t), _full_spec(b),
            _full_spec(w1_t), _full_spec(b1), _full_spec(w2), _full_spec(b2),
        ],
        out_specs=pl.BlockSpec((bt, 1), lambda g: (g, 0)),
        compiler_params=pltpu.CompilerParams(
            dimension_semantics=("parallel",)),   # v7x: shard batch tiles
    )(x_g, wih_t, whh_t, b, w1_t, b1, w2, b2)

    return out[:B]   # drop zero-padded batch rows


# ------------------------- Deterministic params ---------------------------- #
def init_params(key, input_size, hidden_size):
    ks = jax.random.split(key, 8)
    k_lstm = 1.0 / np.sqrt(hidden_size)

    def u(k, shape, bound):
        return jax.random.uniform(k, shape, jnp.float32, -bound, bound)

    return {
        "wih": u(ks[0], (4 * hidden_size, input_size), k_lstm),
        "whh": u(ks[1], (4 * hidden_size, hidden_size), k_lstm),
        "bih": u(ks[2], (4 * hidden_size,), k_lstm),
        "bhh": u(ks[3], (4 * hidden_size,), k_lstm),
        "w1": u(ks[4], (32, hidden_size), 1.0 / np.sqrt(hidden_size)),
        "b1": u(ks[5], (32,), 1.0 / np.sqrt(hidden_size)),
        "w2": u(ks[6], (1, 32), 1.0 / np.sqrt(32)),
        "b2": u(ks[7], (1,), 1.0 / np.sqrt(32)),
    }


# --------------------------- Pure-JAX reference ----------------------------- #
def reference_forward(x_btI, params):
    B, T, I = x_btI.shape
    H = params["whh"].shape[-1]
    h = jnp.zeros((B, H), jnp.float32)
    c = jnp.zeros((B, H), jnp.float32)

    def step(carry, x_t):
        h, c = carry
        gates = (x_t @ params["wih"].T + params["bih"]
                 + h @ params["whh"].T + params["bhh"])
        i_g = jax.nn.sigmoid(gates[:, 0 * H:1 * H])
        f_g = jax.nn.sigmoid(gates[:, 1 * H:2 * H])
        g_g = jnp.tanh(gates[:, 2 * H:3 * H])
        o_g = jax.nn.sigmoid(gates[:, 3 * H:4 * H])
        c = f_g * c + i_g * g_g
        h = o_g * jnp.tanh(c)
        return (h, c), None

    (h, c), _ = lax.scan(step, (h, c), jnp.transpose(x_btI, (1, 0, 2)))
    z1 = jnp.maximum(h @ params["w1"].T + params["b1"], 0.0)
    z2 = z1 @ params["w2"].T + params["b2"]
    return jax.nn.sigmoid(z2)


if __name__ == "__main__":
    B, T, I, H = 2, 8, 8, 32      # batch, seq, input_size, hidden_size

    key = jax.random.PRNGKey(0)
    k_x, k_p = jax.random.split(key)
    x = jax.random.normal(k_x, (B, T, I), jnp.float32)
    params = init_params(k_p, I, H)

    out = risk_assessment_forward(x, params)
    out = jax.block_until_ready(out)

    ref = reference_forward(x, params)
    np.testing.assert_allclose(np.asarray(out), np.asarray(ref),
                               rtol=1e-5, atol=1e-5)

    print("KERNEL_OK")
</pallas_src>

<mosaic_0001>
module attributes {stable_mosaic.version = 11 : i64} {
  func.func @lstm_head_kernel(%arg0: i32, %arg1: memref<1x64x8xf32, #tpu.memory_space<vmem>>, %arg2: memref<8x128xf32, #tpu.memory_space<vmem>>, %arg3: memref<32x128xf32, #tpu.memory_space<vmem>>, %arg4: memref<1x128xf32, #tpu.memory_space<vmem>>, %arg5: memref<32x32xf32, #tpu.memory_space<vmem>>, %arg6: memref<1x32xf32, #tpu.memory_space<vmem>>, %arg7: memref<1x32xf32, #tpu.memory_space<vmem>>, %arg8: memref<1x1xf32, #tpu.memory_space<vmem>>, %arg9: memref<8x1xf32, #tpu.memory_space<vmem>>) attributes {dimension_semantics = [#tpu.dimension_semantics<parallel>], iteration_bounds = array<i64: 1>, scalar_prefetch = 0 : i64, scratch_operands = 0 : i64, tpu.core_type = #tpu.core_type<tc>, window_params = [{transform_indices = @transform_0, window_bounds = array<i64: 1, 64, 8>}, {pipeline_mode = #tpu.pipeline_mode<synchronous>, transform_indices = @transform_1, window_bounds = array<i64: 8, 128>}, {pipeline_mode = #tpu.pipeline_mode<synchronous>, transform_indices = @transform_2, window_bounds = array<i64: 32, 128>}, {pipeline_mode = #tpu.pipeline_mode<synchronous>, transform_indices = @transform_3, window_bounds = array<i64: 1, 128>}, {pipeline_mode = #tpu.pipeline_mode<synchronous>, transform_indices = @transform_4, window_bounds = array<i64: 32, 32>}, {pipeline_mode = #tpu.pipeline_mode<synchronous>, transform_indices = @transform_5, window_bounds = array<i64: 1, 32>}, {pipeline_mode = #tpu.pipeline_mode<synchronous>, transform_indices = @transform_6, window_bounds = array<i64: 1, 32>}, {pipeline_mode = #tpu.pipeline_mode<synchronous>, transform_indices = @transform_7, window_bounds = array<i64: 1, 1>}, {transform_indices = @transform_8, window_bounds = array<i64: 8, 1>}]} {
    %c0 = arith.constant 0 : index
    %c0_0 = arith.constant 0 : index
    %c0_1 = arith.constant 0 : index
    %0 = vector.load %arg1[%c0, %c0_0, %c0_1] : memref<1x64x8xf32, #tpu.memory_space<vmem>>, vector<1x64x8xf32>
    %1 = vector.shape_cast %0 : vector<1x64x8xf32> to vector<64x8xf32>
    %c0_2 = arith.constant 0 : index
    %c0_3 = arith.constant 0 : index
    %2 = vector.load %arg2[%c0_2, %c0_3] : memref<8x128xf32, #tpu.memory_space<vmem>>, vector<8x128xf32>
    %cst = arith.constant dense<0.000000e+00> : vector<64x128xf32>
    %3 = tpu.matmul %1, %2, %cst {dimension_numbers = #tpu.dot_dimension_numbers<[1], [0], [0], [1], [0, 0, 1, 1], [], []>} : vector<64x8xf32>, vector<8x128xf32>, vector<64x128xf32> -> vector<64x128xf32>
    %c0_4 = arith.constant 0 : index
    %c0_5 = arith.constant 0 : index
    %4 = vector.load %arg4[%c0_4, %c0_5] : memref<1x128xf32, #tpu.memory_space<vmem>>, vector<1x128xf32>
    %5 = vector.broadcast %4 : vector<1x128xf32> to vector<64x128xf32>
    %6 = arith.addf %3, %5 : vector<64x128xf32>
    %c0_6 = arith.constant 0 : index
    %c0_7 = arith.constant 0 : index
    %7 = vector.load %arg3[%c0_6, %c0_7] : memref<32x128xf32, #tpu.memory_space<vmem>>, vector<32x128xf32>
    %8 = tpu.iota {dimensions = array<i32: 1>} : vector<8x128xi32>
    %c64_i32 = arith.constant 64 : i32
    %9 = vector.broadcast %c64_i32 : i32 to vector<8x128xi32>
    %10 = arith.cmpi sge, %8, %9 : vector<8x128xi32>
    %c96_i32 = arith.constant 96 : i32
    %11 = vector.broadcast %c96_i32 : i32 to vector<8x128xi32>
    %12 = arith.cmpi slt, %8, %11 : vector<8x128xi32>
    %13 = arith.andi %10, %12 : vector<8x128xi1>
    %cst_8 = arith.constant 0.000000e+00 : f32
    %14 = vector.broadcast %cst_8 : f32 to vector<8x32xf32>
    %cst_9 = arith.constant 0.000000e+00 : f32
    %15 = vector.broadcast %cst_9 : f32 to vector<8x32xf32>
    %16 = vector.extract_strided_slice %6 {offsets = [0, 0], sizes = [8, 128], strides = [1, 1]} : vector<64x128xf32> to vector<8x128xf32>
    %cst_10 = arith.constant dense<0.000000e+00> : vector<8x128xf32>
    %17 = tpu.matmul %14, %7, %cst_10 {dimension_numbers = #tpu.dot_dimension_numbers<[1], [0], [0], [1], [0, 0, 1, 1], [], []>} : vector<8x32xf32>, vector<32x128xf32>, vector<8x128xf32> -> vector<8x128xf32>
    %18 = arith.addf %16, %17 : vector<8x128xf32>
    %19 = math.tanh %18 : vector<8x128xf32>
    %cst_11 = arith.constant 5.000000e-01 : f32
    %20 = vector.broadcast %cst_11 : f32 to vector<8x128xf32>
    %21 = arith.mulf %20, %19 : vector<8x128xf32>
    %cst_12 = arith.constant 5.000000e-01 : f32
    %22 = vector.broadcast %cst_12 : f32 to vector<8x128xf32>
    %23 = arith.addf %21, %22 : vector<8x128xf32>
    %24 = arith.select %13, %19, %23 : vector<8x128xi1>, vector<8x128xf32>
    %25 = vector.extract_strided_slice %24 {offsets = [0, 0], sizes = [8, 32], strides = [1, 1]} : vector<8x128xf32> to vector<8x32xf32>
    %26 = vector.extract_strided_slice %24 {offsets = [0, 32], sizes = [8, 32], strides = [1, 1]} : vector<8x128xf32> to vector<8x32xf32>
    %27 = vector.extract_strided_slice %24 {offsets = [0, 64], sizes = [8, 32], strides = [1, 1]} : vector<8x128xf32> to vector<8x32xf32>
    %28 = vector.extract_strided_slice %24 {offsets = [0, 96], sizes = [8, 32], strides = [1, 1]} : vector<8x128xf32> to vector<8x32xf32>
    %29 = arith.mulf %26, %15 : vector<8x32xf32>
    %30 = arith.mulf %25, %27 : vector<8x32xf32>
    %31 = arith.addf %29, %30 : vector<8x32xf32>
    %32 = math.tanh %31 : vector<8x32xf32>
    %33 = arith.mulf %28, %32 : vector<8x32xf32>
    %34 = vector.extract_strided_slice %6 {offsets = [8, 0], sizes = [8, 128], strides = [1, 1]} : vector<64x128xf32> to vector<8x128xf32>
    %cst_13 = arith.constant dense<0.000000e+00> : vector<8x128xf32>
    %35 = tpu.matmul %33, %7, %cst_13 {dimension_numbers = #tpu.dot_dimension_numbers<[1], [0], [0], [1], [0, 0, 1, 1], [], []>} : vector<8x32xf32>, vector<32x128xf32>, vector<8x128xf32> -> vector<8x128xf32>
    %36 = arith.addf %34, %35 : vector<8x128xf32>
    %37 = math.tanh %36 : vector<8x128xf32>
    %cst_14 = arith.constant 5.000000e-01 : f32
    %38 = vector.broadcast %cst_14 : f32 to vector<8x128xf32>
    %39 = arith.mulf %38, %37 : vector<8x128xf32>
    %cst_15 = arith.constant 5.000000e-01 : f32
    %40 = vector.broadcast %cst_15 : f32 to vector<8x128xf32>
    %41 = arith.addf %39, %40 : vector<8x128xf32>
    %42 = arith.select %13, %37, %41 : vector<8x128xi1>, vector<8x128xf32>
    %43 = vector.extract_strided_slice %42 {offsets = [0, 0], sizes = [8, 32], strides = [1, 1]} : vector<8x128xf32> to vector<8x32xf32>
    %44 = vector.extract_strided_slice %42 {offsets = [0, 32], sizes = [8, 32], strides = [1, 1]} : vector<8x128xf32> to vector<8x32xf32>
    %45 = vector.extract_strided_slice %42 {offsets = [0, 64], sizes = [8, 32], strides = [1, 1]} : vector<8x128xf32> to vector<8x32xf32>
    %46 = vector.extract_strided_slice %42 {offsets = [0, 96], sizes = [8, 32], strides = [1, 1]} : vector<8x128xf32> to vector<8x32xf32>
    %47 = arith.mulf %44, %31 : vector<8x32xf32>
    %48 = arith.mulf %43, %45 : vector<8x32xf32>
    %49 = arith.addf %47, %48 : vector<8x32xf32>
    %50 = math.tanh %49 : vector<8x32xf32>
    %51 = arith.mulf %46, %50 : vector<8x32xf32>
    %52 = vector.extract_strided_slice %6 {offsets = [16, 0], sizes = [8, 128], strides = [1, 1]} : vector<64x128xf32> to vector<8x128xf32>
    %cst_16 = arith.constant dense<0.000000e+00> : vector<8x128xf32>
    %53 = tpu.matmul %51, %7, %cst_16 {dimension_numbers = #tpu.dot_dimension_numbers<[1], [0], [0], [1], [0, 0, 1, 1], [], []>} : vector<8x32xf32>, vector<32x128xf32>, vector<8x128xf32> -> vector<8x128xf32>
    %54 = arith.addf %52, %53 : vector<8x128xf32>
    %55 = math.tanh %54 : vector<8x128xf32>
    %cst_17 = arith.constant 5.000000e-01 : f32
    %56 = vector.broadcast %cst_17 : f32 to vector<8x128xf32>
    %57 = arith.mulf %56, %55 : vector<8x128xf32>
    %cst_18 = arith.constant 5.000000e-01 : f32
    %58 = vector.broadcast %cst_18 : f32 to vector<8x128xf32>
    %59 = arith.addf %57, %58 : vector<8x128xf32>
    %60 = arith.select %13, %55, %59 : vector<8x128xi1>, vector<8x128xf32>
    %61 = vector.extract_strided_slice %60 {offsets = [0, 0], sizes = [8, 32], strides = [1, 1]} : vector<8x128xf32> to vector<8x32xf32>
    %62 = vector.extract_strided_slice %60 {offsets = [0, 32], sizes = [8, 32], strides = [1, 1]} : vector<8x128xf32> to vector<8x32xf32>
    %63 = vector.extract_strided_slice %60 {offsets = [0, 64], sizes = [8, 32], strides = [1, 1]} : vector<8x128xf32> to vector<8x32xf32>
    %64 = vector.extract_strided_slice %60 {offsets = [0, 96], sizes = [8, 32], strides = [1, 1]} : vector<8x128xf32> to vector<8x32xf32>
    %65 = arith.mulf %62, %49 : vector<8x32xf32>
    %66 = arith.mulf %61, %63 : vector<8x32xf32>
    %67 = arith.addf %65, %66 : vector<8x32xf32>
    %68 = math.tanh %67 : vector<8x32xf32>
    %69 = arith.mulf %64, %68 : vector<8x32xf32>
    %70 = vector.extract_strided_slice %6 {offsets = [24, 0], sizes = [8, 128], strides = [1, 1]} : vector<64x128xf32> to vector<8x128xf32>
    %cst_19 = arith.constant dense<0.000000e+00> : vector<8x128xf32>
    %71 = tpu.matmul %69, %7, %cst_19 {dimension_numbers = #tpu.dot_dimension_numbers<[1], [0], [0], [1], [0, 0, 1, 1], [], []>} : vector<8x32xf32>, vector<32x128xf32>, vector<8x128xf32> -> vector<8x128xf32>
    %72 = arith.addf %70, %71 : vector<8x128xf32>
    %73 = math.tanh %72 : vector<8x128xf32>
    %cst_20 = arith.constant 5.000000e-01 : f32
    %74 = vector.broadcast %cst_20 : f32 to vector<8x128xf32>
    %75 = arith.mulf %74, %73 : vector<8x128xf32>
    %cst_21 = arith.constant 5.000000e-01 : f32
    %76 = vector.broadcast %cst_21 : f32 to vector<8x128xf32>
    %77 = arith.addf %75, %76 : vector<8x128xf32>
    %78 = arith.select %13, %73, %77 : vector<8x128xi1>, vector<8x128xf32>
    %79 = vector.extract_strided_slice %78 {offsets = [0, 0], sizes = [8, 32], strides = [1, 1]} : vector<8x128xf32> to vector<8x32xf32>
    %80 = vector.extract_strided_slice %78 {offsets = [0, 32], sizes = [8, 32], strides = [1, 1]} : vector<8x128xf32> to vector<8x32xf32>
    %81 = vector.extract_strided_slice %78 {offsets = [0, 64], sizes = [8, 32], strides = [1, 1]} : vector<8x128xf32> to vector<8x32xf32>
    %82 = vector.extract_strided_slice %78 {offsets = [0, 96], sizes = [8, 32], strides = [1, 1]} : vector<8x128xf32> to vector<8x32xf32>
    %83 = arith.mulf %80, %67 : vector<8x32xf32>
    %84 = arith.mulf %79, %81 : vector<8x32xf32>
    %85 = arith.addf %83, %84 : vector<8x32xf32>
    %86 = math.tanh %85 : vector<8x32xf32>
    %87 = arith.mulf %82, %86 : vector<8x32xf32>
    %88 = vector.extract_strided_slice %6 {offsets = [32, 0], sizes = [8, 128], strides = [1, 1]} : vector<64x128xf32> to vector<8x128xf32>
    %cst_22 = arith.constant dense<0.000000e+00> : vector<8x128xf32>
    %89 = tpu.matmul %87, %7, %cst_22 {dimension_numbers = #tpu.dot_dimension_numbers<[1], [0], [0], [1], [0, 0, 1, 1], [], []>} : vector<8x32xf32>, vector<32x128xf32>, vector<8x128xf32> -> vector<8x128xf32>
    %90 = arith.addf %88, %89 : vector<8x128xf32>
    %91 = math.tanh %90 : vector<8x128xf32>
    %cst_23 = arith.constant 5.000000e-01 : f32
    %92 = vector.broadcast %cst_23 : f32 to vector<8x128xf32>
    %93 = arith.mulf %92, %91 : vector<8x128xf32>
    %cst_24 = arith.constant 5.000000e-01 : f32
    %94 = vector.broadcast %cst_24 : f32 to vector<8x128xf32>
    %95 = arith.addf %93, %94 : vector<8x128xf32>
    %96 = arith.select %13, %91, %95 : vector<8x128xi1>, vector<8x128xf32>
    %97 = vector.extract_strided_slice %96 {offsets = [0, 0], sizes = [8, 32], strides = [1, 1]} : vector<8x128xf32> to vector<8x32xf32>
    %98 = vector.extract_strided_slice %96 {offsets = [0, 32], sizes = [8, 32], strides = [1, 1]} : vector<8x128xf32> to vector<8x32xf32>
    %99 = vector.extract_strided_slice %96 {offsets = [0, 64], sizes = [8, 32], strides = [1, 1]} : vector<8x128xf32> to vector<8x32xf32>
    %100 = vector.extract_strided_slice %96 {offsets = [0, 96], sizes = [8, 32], strides = [1, 1]} : vector<8x128xf32> to vector<8x32xf32>
    %101 = arith.mulf %98, %85 : vector<8x32xf32>
    %102 = arith.mulf %97, %99 : vector<8x32xf32>
    %103 = arith.addf %101, %102 : vector<8x32xf32>
    %104 = math.tanh %103 : vector<8x32xf32>
    %105 = arith.mulf %100, %104 : vector<8x32xf32>
    %106 = vector.extract_strided_slice %6 {offsets = [40, 0], sizes = [8, 128], strides = [1, 1]} : vector<64x128xf32> to vector<8x128xf32>
    %cst_25 = arith.constant dense<0.000000e+00> : vector<8x128xf32>
    %107 = tpu.matmul %105, %7, %cst_25 {dimension_numbers = #tpu.dot_dimension_numbers<[1], [0], [0], [1], [0, 0, 1, 1], [], []>} : vector<8x32xf32>, vector<32x128xf32>, vector<8x128xf32> -> vector<8x128xf32>
    %108 = arith.addf %106, %107 : vector<8x128xf32>
    %109 = math.tanh %108 : vector<8x128xf32>
    %cst_26 = arith.constant 5.000000e-01 : f32
    %110 = vector.broadcast %cst_26 : f32 to vector<8x128xf32>
    %111 = arith.mulf %110, %109 : vector<8x128xf32>
    %cst_27 = arith.constant 5.000000e-01 : f32
    %112 = vector.broadcast %cst_27 : f32 to vector<8x128xf32>
    %113 = arith.addf %111, %112 : vector<8x128xf32>
    %114 = arith.select %13, %109, %113 : vector<8x128xi1>, vector<8x128xf32>
    %115 = vector.extract_strided_slice %114 {offsets = [0, 0], sizes = [8, 32], strides = [1, 1]} : vector<8x128xf32> to vector<8x32xf32>
    %116 = vector.extract_strided_slice %114 {offsets = [0, 32], sizes = [8, 32], strides = [1, 1]} : vector<8x128xf32> to vector<8x32xf32>
    %117 = vector.extract_strided_slice %114 {offsets = [0, 64], sizes = [8, 32], strides = [1, 1]} : vector<8x128xf32> to vector<8x32xf32>
    %118 = vector.extract_strided_slice %114 {offsets = [0, 96], sizes = [8, 32], strides = [1, 1]} : vector<8x128xf32> to vector<8x32xf32>
    %119 = arith.mulf %116, %103 : vector<8x32xf32>
    %120 = arith.mulf %115, %117 : vector<8x32xf32>
    %121 = arith.addf %119, %120 : vector<8x32xf32>
    %122 = math.tanh %121 : vector<8x32xf32>
    %123 = arith.mulf %118, %122 : vector<8x32xf32>
    %124 = vector.extract_strided_slice %6 {offsets = [48, 0], sizes = [8, 128], strides = [1, 1]} : vector<64x128xf32> to vector<8x128xf32>
    %cst_28 = arith.constant dense<0.000000e+00> : vector<8x128xf32>
    %125 = tpu.matmul %123, %7, %cst_28 {dimension_numbers = #tpu.dot_dimension_numbers<[1], [0], [0], [1], [0, 0, 1, 1], [], []>} : vector<8x32xf32>, vector<32x128xf32>, vector<8x128xf32> -> vector<8x128xf32>
    %126 = arith.addf %124, %125 : vector<8x128xf32>
    %127 = math.tanh %126 : vector<8x128xf32>
    %cst_29 = arith.constant 5.000000e-01 : f32
    %128 = vector.broadcast %cst_29 : f32 to vector<8x128xf32>
    %129 = arith.mulf %128, %127 : vector<8x128xf32>
    %cst_30 = arith.constant 5.000000e-01 : f32
    %130 = vector.broadcast %cst_30 : f32 to vector<8x128xf32>
    %131 = arith.addf %129, %130 : vector<8x128xf32>
    %132 = arith.select %13, %127, %131 : vector<8x128xi1>, vector<8x128xf32>
    %133 = vector.extract_strided_slice %132 {offsets = [0, 0], sizes = [8, 32], strides = [1, 1]} : vector<8x128xf32> to vector<8x32xf32>
    %134 = vector.extract_strided_slice %132 {offsets = [0, 32], sizes = [8, 32], strides = [1, 1]} : vector<8x128xf32> to vector<8x32xf32>
    %135 = vector.extract_strided_slice %132 {offsets = [0, 64], sizes = [8, 32], strides = [1, 1]} : vector<8x128xf32> to vector<8x32xf32>
    %136 = vector.extract_strided_slice %132 {offsets = [0, 96], sizes = [8, 32], strides = [1, 1]} : vector<8x128xf32> to vector<8x32xf32>
    %137 = arith.mulf %134, %121 : vector<8x32xf32>
    %138 = arith.mulf %133, %135 : vector<8x32xf32>
    %139 = arith.addf %137, %138 : vector<8x32xf32>
    %140 = math.tanh %139 : vector<8x32xf32>
    %141 = arith.mulf %136, %140 : vector<8x32xf32>
    %142 = vector.extract_strided_slice %6 {offsets = [56, 0], sizes = [8, 128], strides = [1, 1]} : vector<64x128xf32> to vector<8x128xf32>
    %cst_31 = arith.constant dense<0.000000e+00> : vector<8x128xf32>
    %143 = tpu.matmul %141, %7, %cst_31 {dimension_numbers = #tpu.dot_dimension_numbers<[1], [0], [0], [1], [0, 0, 1, 1], [], []>} : vector<8x32xf32>, vector<32x128xf32>, vector<8x128xf32> -> vector<8x128xf32>
    %144 = arith.addf %142, %143 : vector<8x128xf32>
    %145 = math.tanh %144 : vector<8x128xf32>
    %cst_32 = arith.constant 5.000000e-01 : f32
    %146 = vector.broadcast %cst_32 : f32 to vector<8x128xf32>
    %147 = arith.mulf %146, %145 : vector<8x128xf32>
    %cst_33 = arith.constant 5.000000e-01 : f32
    %148 = vector.broadcast %cst_33 : f32 to vector<8x128xf32>
    %149 = arith.addf %147, %148 : vector<8x128xf32>
    %150 = arith.select %13, %145, %149 : vector<8x128xi1>, vector<8x128xf32>
    %151 = vector.extract_strided_slice %150 {offsets = [0, 0], sizes = [8, 32], strides = [1, 1]} : vector<8x128xf32> to vector<8x32xf32>
    %152 = vector.extract_strided_slice %150 {offsets = [0, 32], sizes = [8, 32], strides = [1, 1]} : vector<8x128xf32> to vector<8x32xf32>
    %153 = vector.extract_strided_slice %150 {offsets = [0, 64], sizes = [8, 32], strides = [1, 1]} : vector<8x128xf32> to vector<8x32xf32>
    %154 = vector.extract_strided_slice %150 {offsets = [0, 96], sizes = [8, 32], strides = [1, 1]} : vector<8x128xf32> to vector<8x32xf32>
    %155 = arith.mulf %152, %139 : vector<8x32xf32>
    %156 = arith.mulf %151, %153 : vector<8x32xf32>
    %157 = arith.addf %155, %156 : vector<8x32xf32>
    %158 = math.tanh %157 : vector<8x32xf32>
    %159 = arith.mulf %154, %158 : vector<8x32xf32>
    %c0_34 = arith.constant 0 : index
    %c0_35 = arith.constant 0 : index
    %160 = vector.load %arg5[%c0_34, %c0_35] : memref<32x32xf32, #tpu.memory_space<vmem>>, vector<32x32xf32>
    %cst_36 = arith.constant dense<0.000000e+00> : vector<8x32xf32>
    %161 = tpu.matmul %159, %160, %cst_36 {dimension_numbers = #tpu.dot_dimension_numbers<[1], [0], [0], [1], [0, 0, 1, 1], [], []>} : vector<8x32xf32>, vector<32x32xf32>, vector<8x32xf32> -> vector<8x32xf32>
    %c0_37 = arith.constant 0 : index
    %c0_38 = arith.constant 0 : index
    %162 = vector.load %arg6[%c0_37, %c0_38] : memref<1x32xf32, #tpu.memory_space<vmem>>, vector<1x32xf32>
    %163 = vector.broadcast %162 : vector<1x32xf32> to vector<8x32xf32>
    %164 = arith.addf %161, %163 : vector<8x32xf32>
    %cst_39 = arith.constant 0.000000e+00 : f32
    %165 = vector.broadcast %cst_39 : f32 to vector<8x32xf32>
    %166 = arith.maximumf %164, %165 : vector<8x32xf32>
    %c0_40 = arith.constant 0 : index
    %c0_41 = arith.constant 0 : index
    %167 = vector.load %arg7[%c0_40, %c0_41] : memref<1x32xf32, #tpu.memory_space<vmem>>, vector<1x32xf32>
    %168 = vector.broadcast %167 : vector<1x32xf32> to vector<8x32xf32>
    %169 = arith.mulf %166, %168 : vector<8x32xf32>
    %cst_42 = arith.constant dense<0.000000e+00> : vector<8xf32>
    %170 = vector.multi_reduction <add>, %169, %cst_42 [1] : vector<8x32xf32> to vector<8xf32>
    %171 = vector.shape_cast %170 : vector<8xf32> to vector<8x1xf32>
    %c0_43 = arith.constant 0 : index
    %c0_44 = arith.constant 0 : index
    %172 = vector.load %arg8[%c0_43, %c0_44] : memref<1x1xf32, #tpu.memory_space<vmem>>, vector<1x1xf32>
    %173 = vector.broadcast %172 : vector<1x1xf32> to vector<8x1xf32>
    %174 = arith.addf %171, %173 : vector<8x1xf32>
    %175 = arith.negf %174 : vector<8x1xf32>
    %176 = math.exp %175 : vector<8x1xf32>
    %cst_45 = arith.constant 1.000000e+00 : f32
    %177 = vector.broadcast %cst_45 : f32 to vector<8x1xf32>
    %178 = arith.addf %177, %176 : vector<8x1xf32>
    %179 = arith.divf %177, %178 : vector<8x1xf32>
    %c0_46 = arith.constant 0 : index
    %c0_47 = arith.constant 0 : index
    %180 = vector.load %arg9[%c0_46, %c0_47] : memref<8x1xf32, #tpu.memory_space<vmem>>, vector<8x1xf32>
    tpu.vector_store %arg9[%c0_46, %c0_47], %179 {strides = array<i32>} : memref<8x1xf32, #tpu.memory_space<vmem>>, vector<8x1xf32>,
    return
  }
  func.func @transform_0(%arg0: i32) -> (i32, i32, i32) {
    %c0_i32 = arith.constant 0 : i32
    %c0_i32_0 = arith.constant 0 : i32
    %c0_i32_1 = arith.constant 0 : i32
    return %arg0, %c0_i32, %c0_i32_0 : i32, i32, i32
  }
  func.func @transform_1(%arg0: i32) -> (i32, i32) {
    %c0_i32 = arith.constant 0 : i32
    %c0_i32_0 = arith.constant 0 : i32
    %c0_i32_1 = arith.constant 0 : i32
    return %c0_i32, %c0_i32_0 : i32, i32
  }
  func.func @transform_2(%arg0: i32) -> (i32, i32) {
    %c0_i32 = arith.constant 0 : i32
    %c0_i32_0 = arith.constant 0 : i32
    %c0_i32_1 = arith.constant 0 : i32
    return %c0_i32, %c0_i32_0 : i32, i32
  }
  func.func @transform_3(%arg0: i32) -> (i32, i32) {
    %c0_i32 = arith.constant 0 : i32
    %c0_i32_0 = arith.constant 0 : i32
    %c0_i32_1 = arith.constant 0 : i32
    return %c0_i32, %c0_i32_0 : i32, i32
  }
  func.func @transform_4(%arg0: i32) -> (i32, i32) {
    %c0_i32 = arith.constant 0 : i32
    %c0_i32_0 = arith.constant 0 : i32
    %c0_i32_1 = arith.constant 0 : i32
    return %c0_i32, %c0_i32_0 : i32, i32
  }
  func.func @transform_5(%arg0: i32) -> (i32, i32) {
    %c0_i32 = arith.constant 0 : i32
    %c0_i32_0 = arith.constant 0 : i32
    %c0_i32_1 = arith.constant 0 : i32
    return %c0_i32, %c0_i32_0 : i32, i32
  }
  func.func @transform_6(%arg0: i32) -> (i32, i32) {
    %c0_i32 = arith.constant 0 : i32
    %c0_i32_0 = arith.constant 0 : i32
    %c0_i32_1 = arith.constant 0 : i32
    return %c0_i32, %c0_i32_0 : i32, i32
  }
  func.func @transform_7(%arg0: i32) -> (i32, i32) {
    %c0_i32 = arith.constant 0 : i32
    %c0_i32_0 = arith.constant 0 : i32
    %c0_i32_1 = arith.constant 0 : i32
    return %c0_i32, %c0_i32_0 : i32, i32
  }
  func.func @transform_8(%arg0: i32) -> (i32, i32) {
    %c0_i32 = arith.constant 0 : i32
    %c0_i32_0 = arith.constant 0 : i32
    return %arg0, %c0_i32 : i32, i32
  }
}

</mosaic_0001>

<bundles_post_ra>
// kernel: tpu_custom_call.1
= control target key start
LH: loop header
LB: loop body
LE: loop exit
PB: predicated region body
PF: predicated region fallthrough
CT: control target
= control target key end

     0   :  { %vm44_vm0 = vcmask 64512   ;;  %v628_v7 = vmov 0.0   ;;  %v114_v13 = vlaneseq  ;;  %s630_s19 = smov 32   ;;  %vm119_vm4 = vcmask 261120   ;;  %s870_s1 = inlined_call_operand.vmem [shape: f32[8,128], index: 1, kind: input, shape index: {}]   ;;  %s871_s0 = inlined_call_operand.vmem [shape: f32[1,64,8], index: 0, kind: input, shape index: {}]   ;;  %s872_s2 = inlined_call_operand.vmem [shape: f32[32,128], index: 2, kind: input, shape index: {}]   ;;  %s873_s3 = inlined_call_operand.vmem [shape: f32[1,128], index: 3, kind: input, shape index: {}]   ;;  %s874_s4 = inlined_call_operand.vmem [shape: f32[32,32], index: 4, kind: input, shape index: {}]   ;;  %s875_s5 = inlined_call_operand.vmem [shape: f32[1,32], index: 5, kind: input, shape index: {}]   ;;  %s876_s6 = inlined_call_operand.vmem [shape: f32[1,32], index: 6, kind: input, shape index: {}]   ;;  %s877_s7 = inlined_call_operand.<no memory space> [shape: f32[1,1], index: 7, kind: input, shape index: {}]   ;;  %s878_s8 = inlined_call_operand.vmem [shape: f32[8,1], index: 8, kind: output, shape index: {}]  }
   0x1   :  { %v39_v0 = vld [vmem:[%s870_s1] sm:$0xff]  ;;  %v36_v1 = vld [vmem:[%s871_s0 + $0x28] sm:$0xff]  ;;  %v685_v2 = vld [vmem:[%s872_s2 + $0x18] sm:$0xff]  ;;  %vm560_vm7 = vcmask 7168  }
   0x2   :  { %583 = vmatpush.msra.mxu1 %v39_v0  ;;  %84 = vmatpush.msra.mxu0 %v39_v0  ;;  %v31_v3 = vld [vmem:[%s871_s0] sm:$0xff]  ;;  %v694_v4 = vld [vmem:[%s872_s2 + $0x10] sm:$0xff]  ;;  %v701_v5 = vld [vmem:[%s872_s2 + $0x8] sm:$0xff]  ;;  %v115_v15 = vand.u32 127, %v114_v13 }
   0x3   :  { %571 = vmatmul.msk.f32.vlgmr.msra.gmra.mxu1 %vm44_vm0, %v36_v1  ;;  %566 = vmatmul.msk.f32.vlgmr.msra.gmra.mxu0 %vm44_vm0, %v31_v3  ;;  %v709_v6 = vld [vmem:[%s872_s2] sm:$0xff]  ;;  %v37_v27 = vld [vmem:[%s871_s0 + $0x30] sm:$0xff]  ;;  %v38_v28 = vld [vmem:[%s871_s0 + $0x38] sm:$0xff] }
   0x4   :  { %135 = vmatpush.msrb.mxu1 %v685_v2  ;;  %584 = vmatpush.msra.mxu2 %v39_v0  ;;  %v736_v10 = vld [vmem:[%s873_s3] ss:$0 sm:$0xff]  ;;  %vm116_vm1 = vcmp.ge.s32.totalorder %v115_v15, 64  ;;  %vm117_vm2 = vcmp.lt.s32.totalorder %v115_v15, 96  ;;  %s629_s3 = smov 64   ;;  %v32_v31 = vld [vmem:[%s871_s0 + $0x8] sm:$0xff] }
   0x5   :  { %229 = vmatpush.msra.mxu3 %v685_v2  ;;  %vm739_vm3 = vmand %vm116_vm1, %vm117_vm2  ;;  %572 = vmatmul.msk.f32.vlgmr.msra.gmra.mxu2 %vm44_vm0, %v37_v27  ;;  %v33_v51 = vld [vmem:[%s871_s0 + $0x10] sm:$0xff]  ;;  %v34_v3 = vld [vmem:[%s871_s0 + $0x18] sm:$0xff] }
   0x6   :  { %182 = vmatpush.msrb.mxu2 %v685_v2  ;;  %136 = vmatpush.msrb.mxu1 %v694_v4  ;;  %v496_v18 = vld [vmem:[%s874_s4 + $0x10] sm:$0xff] }
   0x7   :  { %230 = vmatpush.msra.mxu3 %v694_v4 }
   0x8   :  { %183 = vmatpush.msrb.mxu2 %v694_v4  ;;  %137 = vmatpush.msrb.mxu1 %v701_v5 }
   0x9   :  { %231 = vmatpush.msra.mxu3 %v701_v5 }
   0xa   :  { %184 = vmatpush.msrb.mxu2 %v701_v5  ;;  %138 = vmatpush.msrb.mxu1 %v709_v6 }
   0xb   :  { %139 = vmatmul.f32.vlgmr.msrb.gmra.mxu1 %v628_v7  ;;  %232 = vmatpush.msra.mxu3 %v709_v6 }
   0xc   :  { %185 = vmatpush.msrb.mxu2 %v709_v6  ;;  %276 = vmatpush.msra.mxu1 %v685_v2 }
   0xd   :  { %370 = vmatpush.msrb.mxu3 %v685_v2  ;;  %573 = vmatmul.msk.f32.gmra.mxu2 %vm44_vm0, %v38_v28 }
   0xe   :  { %277 = vmatpush.msra.mxu1 %v694_v4  ;;  %323 = vmatpush.msra.mxu2 %v685_v2 }
   0xf   :  { %371 = vmatpush.msrb.mxu3 %v694_v4  ;;  %567 = vmatmul.msk.f32.gmra.mxu0 %vm44_vm0, %v32_v31 }
  0x10   :  { %278 = vmatpush.msra.mxu1 %v701_v5  ;;  %324 = vmatpush.msra.mxu2 %v694_v4 }
  0x11   :  { %372 = vmatpush.msrb.mxu3 %v701_v5 }
  0x12   :  { %279 = vmatpush.msra.mxu1 %v709_v6  ;;  %325 = vmatpush.msra.mxu2 %v701_v5 }
  0x13   :  { %373 = vmatpush.msrb.mxu3 %v709_v6 }
  0x14   :  { %417 = vmatpush.msrb.mxu1 %v685_v2  ;;  %326 = vmatpush.msra.mxu2 %v709_v6 }
  0x16   :  { %418 = vmatpush.msrb.mxu1 %v694_v4 }
  0x17   :  { %568 = vmatmul.msk.f32.gmra.mxu0 %vm44_vm0, %v33_v51 }
  0x18   :  { %419 = vmatpush.msrb.mxu1 %v701_v5 }
  0x1a   :  { %420 = vmatpush.msrb.mxu1 %v709_v6 }
  0x1f   :  { %569 = vmatmul.msk.f32.gmra.mxu0 %vm44_vm0, %v34_v3 }
  0x80   :  { %v731_v8 = vpop.f32.mrf.mxu1  ;;  %v86_v9 = vpop.f32.mrf.mxu0 }
  0x81   :  { %v87_v11 = vadd.f32 %v736_v10, %v86_v9 }
  0x88   :  { %v140_v12 = vpop.f32.mrf.mxu1  ;;  %v770_v33 = vpop.f32.mrf.mxu2 }
  0x89   :  { %v143_v14 = vadd.f32 %v140_v12, %v87_v11 }
  0x8b   :  { %592 = vtanh.f32 %v143_v14 }
  0x8c   :  { %v89_v35 = vpop.f32.mrf.mxu0 }
  0x8d   :  { %v90_v36 = vadd.f32 %v736_v10, %v89_v35 }
  0x90   :  { %v772_v34 = vpop.f32.mrf.mxu2 }
  0x91   :  { %v593_v16 = vpop.eup %592 }
  0x92   :  { %v145_v17 = vmul.f32 0.5, %v593_v16 }
  0x94   :  { %v146_v19 = vadd.f32 0.5, %v145_v17  ;;  %v92_v53 = vpop.f32.mrf.mxu0 }
  0x95   :  { %v93_v54 = vadd.f32 %v736_v10, %v92_v53 }
  0x96   :  { %v147_v20 = vsel %vm739_vm3, %v593_v16, %v146_v19 }
  0x97   :  { %150 = vrot.lane.b32.xlu0 %v147_v20, %s629_s3  ;;  %v148_v23 = vmul.f32 0.0, %v147_v20 }
  0x9c   :  { %v95_v7 = vpop.f32.mrf.mxu0 }
  0x9d   :  { %v96_v9 = vadd.f32 %v736_v10, %v95_v7 }
 0x109   :  { %v151_v21 = vpop.permute.xlu0 %150 }
 0x10a   :  { %v153_v22 = vmul.f32 %v151_v21, %v147_v20 }
 0x10c   :  { %155 = vrot.lane.b32.xlu0 %v153_v22, %s630_s19 }
 0x17e   :  { %v156_v24 = vpop.permute.xlu0 %155 }
 0x17f   :  { %v158_v25 = vadd.f32 %v156_v24, %v148_v23 }
 0x181   :  { %594 = vtanh.f32 %v158_v25 }
 0x187   :  { %v595_v26 = vpop.eup %594 }
 0x188   :  { %161 = vrot.lane.b32.xlu1 %v595_v26, %s629_s3  ;;  %v35_v26 = vld [vmem:[%s871_s0 + $0x20] sm:$0xff] }
 0x189   :  { %570 = vmatmul.msk.f32.gmra.mxu0 %vm44_vm0, %v35_v26 }
 0x1fa   :  { %v162_v29 = vpop.permute.xlu1 %161 }
 0x1fb   :  { %v164_v30 = vmul.f32 %v162_v29, %v147_v20 }
 0x1fd   :  { %166 = vrot.lane.b32.xlu1 %v164_v30, %s630_s19 }
 0x206   :  { %v98_v28 = vpop.f32.mrf.mxu0 }
 0x207   :  { %v99_v29 = vadd.f32 %v736_v10, %v98_v28  ;;  %v495_v28 = vld [vmem:[%s874_s4 + $0x8] sm:$0xff] }
 0x26f   :  { %v167_v32 = vpop.permute.xlu1 %166 }
 0x270   :  { %574 = vmatmul.msk.f32.vlgmr.msrb.gmra.mxu2 %vm119_vm4, %v167_v32 }
 0x271   :  { %464 = vmatpush.msrb.mxu2 %v685_v2 }
 0x273   :  { %465 = vmatpush.msrb.mxu2 %v694_v4 }
 0x275   :  { %466 = vmatpush.msrb.mxu2 %v701_v5 }
 0x277   :  { %467 = vmatpush.msrb.mxu2 %v709_v6 }
 0x2f3   :  { %v187_v37 = vpop.f32.mrf.mxu2 }
 0x2f4   :  { %v190_v38 = vadd.f32 %v187_v37, %v90_v36 }
 0x2f6   :  { %596 = vtanh.f32 %v190_v38 }
 0x2fc   :  { %v597_v39 = vpop.eup %596 }
 0x2fd   :  { %v192_v40 = vmul.f32 0.5, %v597_v39 }
 0x2ff   :  { %v193_v41 = vadd.f32 0.5, %v192_v40 }
 0x301   :  { %v194_v42 = vsel %vm739_vm3, %v597_v39, %v193_v41 }
 0x302   :  { %197 = vrot.lane.b32.xlu2 %v194_v42, %s629_s3  ;;  %v195_v45 = vmul.f32 %v194_v42, %v158_v25 }
 0x35c   :  { %v198_v43 = vpop.permute.xlu2 %197 }
 0x35d   :  { %v200_v44 = vmul.f32 %v198_v43, %v194_v42 }
 0x35f   :  { %202 = vrot.lane.b32.xlu2 %v200_v44, %s630_s19 }
 0x3b9   :  { %v203_v46 = vpop.permute.xlu2 %202 }
 0x3ba   :  { %v205_v47 = vadd.f32 %v203_v46, %v195_v45 }
 0x3bc   :  { %598 = vtanh.f32 %v205_v47 }
 0x3c2   :  { %v599_v48 = vpop.eup %598 }
 0x3c3   :  { %208 = vrot.lane.b32.xlu0 %v599_v48, %s629_s3 }
 0x435   :  { %v209_v49 = vpop.permute.xlu0 %208 }
 0x436   :  { %v211_v50 = vmul.f32 %v209_v49, %v194_v42 }
 0x438   :  { %213 = vrot.lane.b32.xlu1 %v211_v50, %s630_s19 }
 0x4aa   :  { %v214_v52 = vpop.permute.xlu1 %213 }
 0x4ab   :  { %575 = vmatmul.msk.f32.vlgmr.msra.gmra.mxu3 %vm119_vm4, %v214_v52 }
 0x52e   :  { %v234_v55 = vpop.f32.mrf.mxu3 }
 0x52f   :  { %v237_v56 = vadd.f32 %v234_v55, %v93_v54 }
 0x531   :  { %600 = vtanh.f32 %v237_v56 }
 0x537   :  { %v601_v57 = vpop.eup %600 }
 0x538   :  { %v239_v58 = vmul.f32 0.5, %v601_v57 }
 0x53a   :  { %v240_v59 = vadd.f32 0.5, %v239_v58 }
 0x53c   :  { %v241_v60 = vsel %vm739_vm3, %v601_v57, %v240_v59 }
 0x53d   :  { %244 = vrot.lane.b32.xlu2 %v241_v60, %s629_s3  ;;  %v242_v63 = vmul.f32 %v241_v60, %v205_v47  ;;  %v102_v47 = vadd.f32 %v736_v10, %v731_v8 }
 0x597   :  { %v245_v61 = vpop.permute.xlu2 %244 }
 0x598   :  { %v247_v62 = vmul.f32 %v245_v61, %v241_v60 }
 0x59a   :  { %249 = vrot.lane.b32.xlu0 %v247_v62, %s630_s19  ;;  %v105_v62 = vadd.f32 %v736_v10, %v770_v33 }
 0x60c   :  { %v250_v0 = vpop.permute.xlu0 %249 }
 0x60d   :  { %v252_v1 = vadd.f32 %v250_v0, %v242_v63 }
 0x60f   :  { %602 = vtanh.f32 %v252_v1 }
 0x615   :  { %v603_v2 = vpop.eup %602 }
 0x616   :  { %255 = vrot.lane.b32.xlu1 %v603_v2, %s629_s3 }
 0x688   :  { %v256_v4 = vpop.permute.xlu1 %255 }
 0x689   :  { %v258_v5 = vmul.f32 %v256_v4, %v241_v60 }
 0x68b   :  { %260 = vrot.lane.b32.xlu2 %v258_v5, %s630_s19 }
 0x6e5   :  { %v261_v6 = vpop.permute.xlu2 %260 }
 0x6e6   :  { %576 = vmatmul.msk.f32.vlgmr.msra.gmra.mxu1 %vm119_vm4, %v261_v6 }
 0x763   :  { %v281_v11 = vpop.f32.mrf.mxu1 }
 0x764   :  { %v284_v12 = vadd.f32 %v281_v11, %v96_v9 }
 0x766   :  { %604 = vtanh.f32 %v284_v12 }
 0x76c   :  { %v605_v13 = vpop.eup %604 }
 0x76d   :  { %v286_v14 = vmul.f32 0.5, %v605_v13 }
 0x76f   :  { %v287_v15 = vadd.f32 0.5, %v286_v14 }
 0x771   :  { %v288_v16 = vsel %vm739_vm3, %v605_v13, %v287_v15  ;;  %v108_v15 = vadd.f32 %v736_v10, %v772_v34  ;;  %v497_v34 = vld [vmem:[%s874_s4 + $0x18] sm:$0xff] }
 0x772   :  { %291 = vrot.lane.b32.xlu0 %v288_v16, %s629_s3  ;;  %v289_v20 = vmul.f32 %v288_v16, %v252_v1  ;;  %519 = vmatpush.msra.mxu3 %v497_v34 }
 0x774   :  { %520 = vmatpush.msra.mxu3 %v496_v18 }
 0x776   :  { %521 = vmatpush.msra.mxu3 %v495_v28 }
 0x7e4   :  { %v292_v17 = vpop.permute.xlu0 %291 }
 0x7e5   :  { %v294_v19 = vmul.f32 %v292_v17, %v288_v16 }
 0x7e7   :  { %296 = vrot.lane.b32.xlu1 %v294_v19, %s630_s19 }
 0x859   :  { %v297_v21 = vpop.permute.xlu1 %296 }
 0x85a   :  { %v299_v22 = vadd.f32 %v297_v21, %v289_v20 }
 0x85c   :  { %606 = vtanh.f32 %v299_v22 }
 0x862   :  { %v607_v23 = vpop.eup %606 }
 0x863   :  { %302 = vrot.lane.b32.xlu2 %v607_v23, %s629_s3 }
 0x8bd   :  { %v303_v24 = vpop.permute.xlu2 %302 }
 0x8be   :  { %v305_v25 = vmul.f32 %v303_v24, %v288_v16 }
 0x8c0   :  { %307 = vrot.lane.b32.xlu0 %v305_v25, %s630_s19 }
 0x932   :  { %v308_v27 = vpop.permute.xlu0 %307 }
 0x933   :  { %577 = vmatmul.msk.f32.vlgmr.msra.gmra.mxu2 %vm119_vm4, %v308_v27 }
 0x9b6   :  { %v328_v30 = vpop.f32.mrf.mxu2 }
 0x9b7   :  { %v331_v31 = vadd.f32 %v328_v30, %v99_v29  ;;  %v494_v29 = vld [vmem:[%s874_s4] sm:$0xff] }
 0x9b8   :  { %522 = vmatpush.msra.mxu3 %v494_v29 }
 0x9b9   :  { %608 = vtanh.f32 %v331_v31 }
 0x9bf   :  { %v609_v32 = vpop.eup %608 }
 0x9c0   :  { %v333_v35 = vmul.f32 0.5, %v609_v32 }
 0x9c2   :  { %v334_v36 = vadd.f32 0.5, %v333_v35  ;;  %v13_v35 = vstv %s877_s7 }
 0x9c3   :  { %14 = vst [vmem:[#allocation2] sm:$0x1] %v13_v35 }
 0x9c4   :  { %v335_v37 = vsel %vm739_vm3, %v609_v32, %v334_v36  ;;  %v589_v36 = vld [vmem:[%s875_s5] ss:$0 sm:$0xff] }
 0x9c5   :  { %338 = vrot.lane.b32.xlu1 %v335_v37, %s629_s3  ;;  %v336_v40 = vmul.f32 %v335_v37, %v299_v22 }
 0xa37   :  { %v339_v38 = vpop.permute.xlu1 %338 }
 0xa38   :  { %v341_v39 = vmul.f32 %v339_v38, %v335_v37 }
 0xa3a   :  { %343 = vrot.lane.b32.xlu2 %v341_v39, %s630_s19  ;;  %v590_v39 = vld [vmem:[%s876_s6] ss:$0 sm:$0xff] }
 0xa94   :  { %v344_v41 = vpop.permute.xlu2 %343 }
 0xa95   :  { %v346_v42 = vadd.f32 %v344_v41, %v336_v40 }
 0xa97   :  { %610 = vtanh.f32 %v346_v42 }
 0xa9d   :  { %v611_v43 = vpop.eup %610 }
 0xa9e   :  { %349 = vrot.lane.b32.xlu0 %v611_v43, %s629_s3  ;;  %v591_v43 = vld [vmem:[#allocation2] ss:$0 sm:$0xff] }
 0xb10   :  { %v350_v44 = vpop.permute.xlu0 %349 }
 0xb11   :  { %v352_v45 = vmul.f32 %v350_v44, %v335_v37 }
 0xb13   :  { %354 = vrot.lane.b32.xlu1 %v352_v45, %s630_s19 }
 0xb85   :  { %v355_v46 = vpop.permute.xlu1 %354 }
 0xb86   :  { %578 = vmatmul.msk.f32.vlgmr.msrb.gmra.mxu3 %vm119_vm4, %v355_v46 }
 0xc09   :  { %v375_v48 = vpop.f32.mrf.mxu3 }
 0xc0a   :  { %v378_v49 = vadd.f32 %v375_v48, %v102_v47 }
 0xc0c   :  { %612 = vtanh.f32 %v378_v49 }
 0xc12   :  { %v613_v50 = vpop.eup %612 }
 0xc13   :  { %v380_v51 = vmul.f32 0.5, %v613_v50 }
 0xc15   :  { %v381_v52 = vadd.f32 0.5, %v380_v51 }
 0xc17   :  { %v382_v53 = vsel %vm739_vm3, %v613_v50, %v381_v52 }
 0xc18   :  { %385 = vrot.lane.b32.xlu2 %v382_v53, %s629_s3  ;;  %v383_v56 = vmul.f32 %v382_v53, %v346_v42 }
 0xc72   :  { %v386_v54 = vpop.permute.xlu2 %385 }
 0xc73   :  { %v388_v55 = vmul.f32 %v386_v54, %v382_v53 }
 0xc75   :  { %390 = vrot.lane.b32.xlu0 %v388_v55, %s630_s19 }
 0xce7   :  { %v391_v57 = vpop.permute.xlu0 %390 }
 0xce8   :  { %v393_v58 = vadd.f32 %v391_v57, %v383_v56 }
 0xcea   :  { %614 = vtanh.f32 %v393_v58 }
 0xcf0   :  { %v615_v8 = vpop.eup %614 }
 0xcf1   :  { %396 = vrot.lane.b32.xlu1 %v615_v8, %s629_s3 }
 0xd63   :  { %v397_v59 = vpop.permute.xlu1 %396 }
 0xd64   :  { %v399_v60 = vmul.f32 %v397_v59, %v382_v53 }
 0xd66   :  { %401 = vrot.lane.b32.xlu2 %v399_v60, %s630_s19 }
 0xdc0   :  { %v402_v61 = vpop.permute.xlu2 %401 }
 0xdc1   :  { %579 = vmatmul.msk.f32.vlgmr.msrb.gmra.mxu1 %vm119_vm4, %v402_v61 }
 0xe3e   :  { %v422_v63 = vpop.f32.mrf.mxu1 }
 0xe3f   :  { %v425_v0 = vadd.f32 %v422_v63, %v105_v62 }
 0xe41   :  { %616 = vtanh.f32 %v425_v0 }
 0xe47   :  { %v617_v1 = vpop.eup %616 }
 0xe48   :  { %v427_v2 = vmul.f32 0.5, %v617_v1 }
 0xe4a   :  { %v428_v3 = vadd.f32 0.5, %v427_v2 }
 0xe4c   :  { %v429_v4 = vsel %vm739_vm3, %v617_v1, %v428_v3 }
 0xe4d   :  { %432 = vrot.lane.b32.xlu0 %v429_v4, %s629_s3  ;;  %v430_v7 = vmul.f32 %v429_v4, %v393_v58 }
 0xebf   :  { %v433_v5 = vpop.permute.xlu0 %432 }
 0xec0   :  { %v435_v6 = vmul.f32 %v433_v5, %v429_v4 }
 0xec2   :  { %437 = vrot.lane.b32.xlu1 %v435_v6, %s630_s19 }
 0xf34   :  { %v438_v9 = vpop.permute.xlu1 %437 }
 0xf35   :  { %v440_v11 = vadd.f32 %v438_v9, %v430_v7 }
 0xf37   :  { %618 = vtanh.f32 %v440_v11 }
 0xf3d   :  { %v619_v33 = vpop.eup %618 }
 0xf3e   :  { %443 = vrot.lane.b32.xlu2 %v619_v33, %s629_s3 }
 0xf98   :  { %v444_v12 = vpop.permute.xlu2 %443 }
 0xf99   :  { %v446_v13 = vmul.f32 %v444_v12, %v429_v4 }
 0xf9b   :  { %448 = vrot.lane.b32.xlu0 %v446_v13, %s630_s19 }
0x100d   :  { %v449_v14 = vpop.permute.xlu0 %448 }
0x100e   :  { %580 = vmatmul.msk.f32.vlgmr.msrb.gmra.mxu2 %vm119_vm4, %v449_v14 }
0x1091   :  { %v469_v16 = vpop.f32.mrf.mxu2 }
0x1092   :  { %v472_v17 = vadd.f32 %v469_v16, %v108_v15 }
0x1094   :  { %620 = vtanh.f32 %v472_v17 }
0x109a   :  { %v621_v19 = vpop.eup %620 }
0x109b   :  { %v474_v20 = vmul.f32 0.5, %v621_v19 }
0x109d   :  { %v475_v21 = vadd.f32 0.5, %v474_v20 }
0x109f   :  { %v476_v22 = vsel %vm739_vm3, %v621_v19, %v475_v21 }
0x10a0   :  { %479 = vrot.lane.b32.xlu1 %v476_v22, %s629_s3  ;;  %v477_v25 = vmul.f32 %v476_v22, %v440_v11 }
0x1112   :  { %v480_v23 = vpop.permute.xlu1 %479 }
0x1113   :  { %v482_v24 = vmul.f32 %v480_v23, %v476_v22 }
0x1115   :  { %484 = vrot.lane.b32.xlu2 %v482_v24, %s630_s19 }
0x116f   :  { %v485_v26 = vpop.permute.xlu2 %484 }
0x1170   :  { %v487_v27 = vadd.f32 %v485_v26, %v477_v25 }
0x1172   :  { %622 = vtanh.f32 %v487_v27 }
0x1178   :  { %v623_v10 = vpop.eup %622 }
0x1179   :  { %490 = vrot.lane.b32.xlu0 %v623_v10, %s629_s3 }
0x11eb   :  { %v491_v30 = vpop.permute.xlu0 %490 }
0x11ec   :  { %v493_v31 = vmul.f32 %v491_v30, %v476_v22 }
0x11ee   :  { %503 = vrot.lane.b32.xlu1 %v493_v31, %s630_s19 }
0x1260   :  { %v504_v32 = vpop.permute.xlu1 %503 }
0x1261   :  { %581 = vmatmul.msk.f32.vlgmr.msra.gmra.mxu3 %vm119_vm4, %v504_v32 }
0x12e4   :  { %v524_v37 = vpop.f32.mrf.mxu3 }
0x12e5   :  { %v525_v38 = vadd.f32 %v589_v36, %v524_v37 }
0x12e7   :  { %v527_v40 = vmax.f32 %v525_v38, 0.0 }
0x12e9   :  { %v532_v41 = vmul.f32 %v590_v39, %v527_v40 }
0x12eb   :  { %v533_v42 = vsel %vm119_vm4, %v532_v41, 0.0 }
0x12ec   :  { %534 = vadd.xlane.f32.xlu2 %v533_v42 }
0x135f   :  { %v535_v44 = vpop.xlane.xlu2 %534 }
0x1360   :  { %v540_v45 = vadd.f32 %v591_v43, %v535_v44 }
0x1362   :  { %v582_v46 = vmul.f32 -1.442695, %v540_v45 }
0x1364   :  { %624 = vpow2.f32 %v582_v46 }
0x136a   :  { %v625_v47 = vpop.eup %624 }
0x136b   :  { %v544_v48 = vadd.f32 1.0, %v625_v47 }
0x136d   :  { %626 = vrcp.f32 %v544_v48  ;;  %v556_v52 = vand.u32 2147483648, %v544_v48  ;;  %v554_v54 = vand.u32 2147483647, %v544_v48  ;;  %vm550_vm6 = vweird.f32 %v544_v48 }
0x136f   :  { %v557_v56 = vor.u32 1.1754944e-38, %v556_v52  ;;  %vm555_vm9 = vcmp.eq.f32.partialorder %v554_v54, 8.507059e+37 }
0x1373   :  { %v627_v49 = vpop.eup %626 }
0x1374   :  { %v546_v50 = vmul.f32 %v627_v49, %v544_v48  ;;  %vm551_vm5 = vweird.f32 %v627_v49 }
0x1375   :  { %vm552_vm8 = vmor %vm550_vm6, %vm551_vm5 }
0x1376   :  { %v547_v51 = vsub.f32 1.0, %v546_v50 }
0x1378   :  { %v548_v53 = vmul.f32 %v627_v49, %v547_v51 }
0x137a   :  { %v549_v55 = vadd.f32 %v627_v49, %v548_v53 }
0x137c   :  { %v553_v57 = vsel %vm552_vm8, %v627_v49, %v549_v55 }
0x137d   :  { %v558_v58 = vsel %vm555_vm9, %v557_v56, %v553_v57 }
0x137e   :  { %561 = vst.msk [vmem:[%s878_s8] sm:$0xff] %vm560_vm7, %v558_v58 }

</bundles_post_ra>
